<compile_context>
chip_gen: v6e
topology: v6e:2x2x1
jax: 0.10.0
libtpu: 0.0.40
codegen_flags: <defaults>
</compile_context>

<pallas_src>
import jax
import jax.numpy as jnp
from jax.experimental import pallas as pl
from jax.experimental.pallas import tpu as pltpu

INPUT_SIZE = 9
IN_PAD = 16          # input lanes: 0..8 data, 9 = constant-1 bias lane, 10..15 zero
H3_PAD = 128         # layer-3 width padded 64 -> 128; lane 64 = constant-1 bias lane
OUT_PAD = 16         # output lanes: 0..8 data, 9..15 zero (sliced off outside)
BLOCK_B = 1024       # batch rows per grid step (clamped down for tiny batches)
_LAYER_WIDTHS = [(INPUT_SIZE, 256), (256, 128), (128, 64), (64, INPUT_SIZE)]


def _round_up(n, m):
    return ((n + m - 1) // m) * m


def _mlp_kernel(x_ref,
                w1_ref,
                w2_ref, b2_ref,
                w3_ref, b3_ref,
                w4_ref,
                o_ref):
    """Fused 4-layer MLP on one (tb, 16) batch tile.

    Dots take bf16 operands with f32 accumulation; b1/b4 are folded into w1/w4
    via constant-1 lanes, b2/b3 are added in f32 on the VPU.
    """
    x = x_ref[...]  # (tb, 16) bf16; lane 9 == 1.0 (bias lane), lanes 10..15 zero

    # fc1 + relu   (b1 folded into w1 row 9)
    h = jnp.dot(x, w1_ref[...], preferred_element_type=jnp.float32)
    h = jnp.maximum(h, 0.0).astype(jnp.bfloat16)           # (tb, 256)

    # fc2 + relu
    h = jnp.dot(h, w2_ref[...], preferred_element_type=jnp.float32) + b2_ref[...]
    h = jnp.maximum(h, 0.0).astype(jnp.bfloat16)            # (tb, 128)

    # fc3 + relu   (padded to 128 lanes; b3 lane 64 == 1.0 -> h lane 64 == 1)
    h = jnp.dot(h, w3_ref[...], preferred_element_type=jnp.float32) + b3_ref[...]
    h = jnp.maximum(h, 0.0).astype(jnp.bfloat16)            # (tb, 128)

    # fc4          (b4 folded into w4 row 64 via the constant-1 lane)
    h = jnp.dot(h, w4_ref[...], preferred_element_type=jnp.float32)  # (tb, 16)

    o_ref[...] = h.astype(o_ref.dtype)


def init_params(key, input_size=INPUT_SIZE):
    """nn.Linear-style U(-1/sqrt(fan_in), 1/sqrt(fan_in)) init.

    Weights stored transposed vs PyTorch: (in, out). Biases: (1, out). f32.
    """
    params = {}
    for i, (fan_in, fan_out) in enumerate(_LAYER_WIDTHS, start=1):
        key, kw, kb = jax.random.split(key, 3)
        bound = 1.0 / jnp.sqrt(float(fan_in))
        params[f"w{i}"] = jax.random.uniform(
            kw, (fan_in, fan_out), jnp.float32, minval=-bound, maxval=bound)
        params[f"b{i}"] = jax.random.uniform(
            kb, (1, fan_out), jnp.float32, minval=-bound, maxval=bound)
    return params


def prepare_params(params):
    """Pad / fold params into kernel layout (run once).

    - w1: (9, 256)  -> (16, 256) bf16, b1 placed in row 9 (input bias lane).
    - w2: (256, 128) bf16, b2: (1, 128) f32.
    - w3: (128, 64) -> (128, 128) bf16 (zero cols 64..127).
    - b3: (1, 64)   -> (1, 128) f32 with lane 64 set to 1.0 (constant-1 lane).
    - w4: (64, 9)   -> (128, 16) bf16, b4 placed in row 64 (picks up the 1-lane).
    """
    p = {}

    w1 = jnp.zeros((IN_PAD, 256), jnp.bfloat16)
    w1 = w1.at[:INPUT_SIZE, :].set(params["w1"].astype(jnp.bfloat16))
    w1 = w1.at[INPUT_SIZE, :].set(params["b1"][0].astype(jnp.bfloat16))
    p["w1"] = w1

    p["w2"] = params["w2"].astype(jnp.bfloat16)              # (256, 128)
    p["b2"] = params["b2"].astype(jnp.float32)                # (1, 128)

    w3 = jnp.zeros((128, H3_PAD), jnp.bfloat16)
    w3 = w3.at[:, :64].set(params["w3"].astype(jnp.bfloat16))
    p["w3"] = w3

    b3 = jnp.zeros((1, H3_PAD), jnp.float32)
    b3 = b3.at[:, :64].set(params["b3"].astype(jnp.float32))
    b3 = b3.at[:, 64].set(1.0)                                # constant-1 lane for b4
    p["b3"] = b3

    w4 = jnp.zeros((H3_PAD, OUT_PAD), jnp.bfloat16)
    w4 = w4.at[:64, :INPUT_SIZE].set(params["w4"].astype(jnp.bfloat16))
    w4 = w4.at[64, :INPUT_SIZE].set(params["b4"][0].astype(jnp.bfloat16))
    p["w4"] = w4

    return p


def stress_strain_fcn_forward(x, prepared, input_size=INPUT_SIZE, block_b=BLOCK_B):
    """x: (B, input_size) f32. prepared: output of prepare_params(). Returns (B, input_size) f32."""
    B, F = x.shape
    assert F == input_size

    # Batch tile: big enough to amortize per-step overhead, clamped for tiny batches.
    tb = min(block_b, _round_up(max(B, 8), 8))
    b_pad = _round_up(B, tb)
    grid = (b_pad // tb,)

    # Narrow bf16 input slab: lanes 0..8 data, lane 9 = 1.0 (bias lane), rest zero.
    xp = jnp.zeros((b_pad, IN_PAD), jnp.bfloat16)
    xp = xp.at[:B, :input_size].set(x.astype(jnp.bfloat16))
    xp = xp.at[:B, input_size].set(1.0)

    def tile_spec(shape):          # batch-tiled activations / output
        return pl.BlockSpec(shape, lambda i: (i, 0))

    def resident_spec(shape):      # VMEM-resident weights / biases
        return pl.BlockSpec(shape, lambda i: (0, 0))

    out_padded = pl.pallas_call(
        _mlp_kernel,
        out_shape=jax.ShapeDtypeStruct((b_pad, OUT_PAD), jnp.float32),
        grid=grid,
        in_specs=[
            tile_spec((tb, IN_PAD)),
            resident_spec(prepared["w1"].shape),
            resident_spec(prepared["w2"].shape), resident_spec(prepared["b2"].shape),
            resident_spec(prepared["w3"].shape), resident_spec(prepared["b3"].shape),
            resident_spec(prepared["w4"].shape),
        ],
        out_specs=tile_spec((tb, OUT_PAD)),
        compiler_params=pltpu.CompilerParams(
            dimension_semantics=("parallel",),
        ),
    )(
        xp,
        prepared["w1"],
        prepared["w2"], prepared["b2"],
        prepared["w3"], prepared["b3"],
        prepared["w4"],
    )

    return out_padded[:B, :input_size]


def reference_forward(x, params, use_bf16_operands=True):
    """Plain-JAX reference matching the PyTorch forward (optionally with the same
    bf16 operand casts / f32 accumulation the kernel uses)."""
    def cast(a):
        return a.astype(jnp.bfloat16) if use_bf16_operands else a

    def dot(a, w):
        return jnp.dot(cast(a), cast(w), preferred_element_type=jnp.float32)

    h = jnp.maximum(dot(x, params["w1"]) + params["b1"], 0.0)
    h = jnp.maximum(dot(h, params["w2"]) + params["b2"], 0.0)
    h = jnp.maximum(dot(h, params["w3"]) + params["b3"], 0.0)
    return dot(h, params["w4"]) + params["b4"]


if __name__ == "__main__":
    batch = 8  # NOTE: at B=8 the call is launch-latency bound; batch requests at the call site.

    key = jax.random.PRNGKey(0)
    key, kx = jax.random.split(key)
    params = init_params(key, input_size=INPUT_SIZE)
    prepared = prepare_params(params)

    # The PyTorch module flattens x to (B, input_size); we construct it flat.
    x = jax.random.normal(kx, (batch, INPUT_SIZE), jnp.float32)

    out = stress_strain_fcn_forward(x, prepared)
    out = jax.block_until_ready(out)

    # Check against a reference using the same bf16-operand / f32-accumulate math
    # (b1/b4 folding introduces only a bf16 rounding of the biases).
    ref_bf16 = reference_forward(x, params, use_bf16_operands=True)
    # And loosely against the pure-f32 PyTorch-equivalent forward.
    ref_f32 = reference_forward(x, params, use_bf16_operands=False)

    assert out.shape == (batch, INPUT_SIZE)
    assert jnp.allclose(out, ref_bf16, atol=1e-2, rtol=1e-2)
    assert jnp.allclose(out, ref_f32, atol=5e-2, rtol=5e-2)

    print("KERNEL_OK")
</pallas_src>

<mosaic_0001>
module attributes {stable_mosaic.version = 11 : i64} {
  func.func @_mlp_kernel(%arg0: i32, %arg1: memref<8x16xbf16, #tpu.memory_space<vmem>>, %arg2: memref<16x256xbf16, #tpu.memory_space<vmem>>, %arg3: memref<256x128xbf16, #tpu.memory_space<vmem>>, %arg4: memref<1x128xf32, #tpu.memory_space<vmem>>, %arg5: memref<128x128xbf16, #tpu.memory_space<vmem>>, %arg6: memref<1x128xf32, #tpu.memory_space<vmem>>, %arg7: memref<128x16xbf16, #tpu.memory_space<vmem>>, %arg8: memref<8x16xf32, #tpu.memory_space<vmem>>) attributes {dimension_semantics = [#tpu.dimension_semantics<parallel>], iteration_bounds = array<i64: 1>, scalar_prefetch = 0 : i64, scratch_operands = 0 : i64, tpu.core_type = #tpu.core_type<tc>, window_params = [{transform_indices = @transform_0, window_bounds = array<i64: 8, 16>}, {pipeline_mode = #tpu.pipeline_mode<synchronous>, transform_indices = @transform_1, window_bounds = array<i64: 16, 256>}, {pipeline_mode = #tpu.pipeline_mode<synchronous>, transform_indices = @transform_2, window_bounds = array<i64: 256, 128>}, {pipeline_mode = #tpu.pipeline_mode<synchronous>, transform_indices = @transform_3, window_bounds = array<i64: 1, 128>}, {pipeline_mode = #tpu.pipeline_mode<synchronous>, transform_indices = @transform_4, window_bounds = array<i64: 128, 128>}, {pipeline_mode = #tpu.pipeline_mode<synchronous>, transform_indices = @transform_5, window_bounds = array<i64: 1, 128>}, {pipeline_mode = #tpu.pipeline_mode<synchronous>, transform_indices = @transform_6, window_bounds = array<i64: 128, 16>}, {transform_indices = @transform_7, window_bounds = array<i64: 8, 16>}]} {
    %c0 = arith.constant 0 : index
    %c0_0 = arith.constant 0 : index
    %0 = vector.load %arg1[%c0, %c0_0] : memref<8x16xbf16, #tpu.memory_space<vmem>>, vector<8x16xbf16>
    %c0_1 = arith.constant 0 : index
    %c0_2 = arith.constant 0 : index
    %1 = vector.load %arg2[%c0_1, %c0_2] : memref<16x256xbf16, #tpu.memory_space<vmem>>, vector<16x256xbf16>
    %cst = arith.constant dense<0.000000e+00> : vector<8x256xf32>
    %2 = tpu.matmul %0, %1, %cst {dimension_numbers = #tpu.dot_dimension_numbers<[1], [0], [0], [1], [0, 0, 1, 1], [], []>} : vector<8x16xbf16>, vector<16x256xbf16>, vector<8x256xf32> -> vector<8x256xf32>
    %cst_3 = arith.constant 0.000000e+00 : f32
    %3 = vector.broadcast %cst_3 : f32 to vector<8x256xf32>
    %4 = arith.maximumf %2, %3 : vector<8x256xf32>
    %5 = arith.truncf %4 : vector<8x256xf32> to vector<8x256xbf16>
    %c0_4 = arith.constant 0 : index
    %c0_5 = arith.constant 0 : index
    %6 = vector.load %arg3[%c0_4, %c0_5] : memref<256x128xbf16, #tpu.memory_space<vmem>>, vector<256x128xbf16>
    %cst_6 = arith.constant dense<0.000000e+00> : vector<8x128xf32>
    %7 = tpu.matmul %5, %6, %cst_6 {dimension_numbers = #tpu.dot_dimension_numbers<[1], [0], [0], [1], [0, 0, 1, 1], [], []>} : vector<8x256xbf16>, vector<256x128xbf16>, vector<8x128xf32> -> vector<8x128xf32>
    %c0_7 = arith.constant 0 : index
    %c0_8 = arith.constant 0 : index
    %8 = vector.load %arg4[%c0_7, %c0_8] : memref<1x128xf32, #tpu.memory_space<vmem>>, vector<1x128xf32>
    %9 = vector.broadcast %8 : vector<1x128xf32> to vector<8x128xf32>
    %10 = arith.addf %7, %9 : vector<8x128xf32>
    %cst_9 = arith.constant 0.000000e+00 : f32
    %11 = vector.broadcast %cst_9 : f32 to vector<8x128xf32>
    %12 = arith.maximumf %10, %11 : vector<8x128xf32>
    %13 = arith.truncf %12 : vector<8x128xf32> to vector<8x128xbf16>
    %c0_10 = arith.constant 0 : index
    %c0_11 = arith.constant 0 : index
    %14 = vector.load %arg5[%c0_10, %c0_11] : memref<128x128xbf16, #tpu.memory_space<vmem>>, vector<128x128xbf16>
    %cst_12 = arith.constant dense<0.000000e+00> : vector<8x128xf32>
    %15 = tpu.matmul %13, %14, %cst_12 {dimension_numbers = #tpu.dot_dimension_numbers<[1], [0], [0], [1], [0, 0, 1, 1], [], []>} : vector<8x128xbf16>, vector<128x128xbf16>, vector<8x128xf32> -> vector<8x128xf32>
    %c0_13 = arith.constant 0 : index
    %c0_14 = arith.constant 0 : index
    %16 = vector.load %arg6[%c0_13, %c0_14] : memref<1x128xf32, #tpu.memory_space<vmem>>, vector<1x128xf32>
    %17 = vector.broadcast %16 : vector<1x128xf32> to vector<8x128xf32>
    %18 = arith.addf %15, %17 : vector<8x128xf32>
    %cst_15 = arith.constant 0.000000e+00 : f32
    %19 = vector.broadcast %cst_15 : f32 to vector<8x128xf32>
    %20 = arith.maximumf %18, %19 : vector<8x128xf32>
    %21 = arith.truncf %20 : vector<8x128xf32> to vector<8x128xbf16>
    %c0_16 = arith.constant 0 : index
    %c0_17 = arith.constant 0 : index
    %22 = vector.load %arg7[%c0_16, %c0_17] : memref<128x16xbf16, #tpu.memory_space<vmem>>, vector<128x16xbf16>
    %cst_18 = arith.constant dense<0.000000e+00> : vector<8x16xf32>
    %23 = tpu.matmul %21, %22, %cst_18 {dimension_numbers = #tpu.dot_dimension_numbers<[1], [0], [0], [1], [0, 0, 1, 1], [], []>} : vector<8x128xbf16>, vector<128x16xbf16>, vector<8x16xf32> -> vector<8x16xf32>
    %c0_19 = arith.constant 0 : index
    %c0_20 = arith.constant 0 : index
    %24 = vector.load %arg8[%c0_19, %c0_20] : memref<8x16xf32, #tpu.memory_space<vmem>>, vector<8x16xf32>
    tpu.vector_store %arg8[%c0_19, %c0_20], %23 {strides = array<i32>} : memref<8x16xf32, #tpu.memory_space<vmem>>, vector<8x16xf32>,
    return
  }
  func.func @transform_0(%arg0: i32) -> (i32, i32) {
    %c0_i32 = arith.constant 0 : i32
    %c0_i32_0 = arith.constant 0 : i32
    return %arg0, %c0_i32 : i32, i32
  }
  func.func @transform_1(%arg0: i32) -> (i32, i32) {
    %c0_i32 = arith.constant 0 : i32
    %c0_i32_0 = arith.constant 0 : i32
    %c0_i32_1 = arith.constant 0 : i32
    return %c0_i32, %c0_i32_0 : i32, i32
  }
  func.func @transform_2(%arg0: i32) -> (i32, i32) {
    %c0_i32 = arith.constant 0 : i32
    %c0_i32_0 = arith.constant 0 : i32
    %c0_i32_1 = arith.constant 0 : i32
    return %c0_i32, %c0_i32_0 : i32, i32
  }
  func.func @transform_3(%arg0: i32) -> (i32, i32) {
    %c0_i32 = arith.constant 0 : i32
    %c0_i32_0 = arith.constant 0 : i32
    %c0_i32_1 = arith.constant 0 : i32
    return %c0_i32, %c0_i32_0 : i32, i32
  }
  func.func @transform_4(%arg0: i32) -> (i32, i32) {
    %c0_i32 = arith.constant 0 : i32
    %c0_i32_0 = arith.constant 0 : i32
    %c0_i32_1 = arith.constant 0 : i32
    return %c0_i32, %c0_i32_0 : i32, i32
  }
  func.func @transform_5(%arg0: i32) -> (i32, i32) {
    %c0_i32 = arith.constant 0 : i32
    %c0_i32_0 = arith.constant 0 : i32
    %c0_i32_1 = arith.constant 0 : i32
    return %c0_i32, %c0_i32_0 : i32, i32
  }
  func.func @transform_6(%arg0: i32) -> (i32, i32) {
    %c0_i32 = arith.constant 0 : i32
    %c0_i32_0 = arith.constant 0 : i32
    %c0_i32_1 = arith.constant 0 : i32
    return %c0_i32, %c0_i32_0 : i32, i32
  }
  func.func @transform_7(%arg0: i32) -> (i32, i32) {
    %c0_i32 = arith.constant 0 : i32
    %c0_i32_0 = arith.constant 0 : i32
    return %arg0, %c0_i32 : i32, i32
  }
}

</mosaic_0001>

<bundles_post_ra>
// kernel: tpu_custom_call.1
= control target key start
LH: loop header
LB: loop body
LE: loop exit
PB: predicated region body
PF: predicated region fallthrough
CT: control target
= control target key end

     0   :  { %12 = vsyncpa [#allocation3], 0  ;;  %s893_s0 = inlined_call_operand.vmem [shape: bf16[8,16], index: 0, kind: input, shape index: {}]   ;;  %s894_s1 = inlined_call_operand.hbm [shape: bf16[16,256], index: 1, kind: input, shape index: {}]   ;;  %s895_s2 = inlined_call_operand.hbm [shape: bf16[256,128], index: 2, kind: input, shape index: {}]   ;;  %s896_s3 = inlined_call_operand.vmem [shape: f32[1,128], index: 3, kind: input, shape index: {}]   ;;  %s897_s4 = inlined_call_operand.vmem [shape: bf16[128,128], index: 4, kind: input, shape index: {}]   ;;  %s898_s5 = inlined_call_operand.vmem [shape: f32[1,128], index: 5, kind: input, shape index: {}]   ;;  %s899_s6 = inlined_call_operand.vmem [shape: bf16[128,16], index: 6, kind: input, shape index: {}]   ;;  %s900_s7 = inlined_call_operand.hbm [shape: f32[8,16], index: 7, kind: output, shape index: {}]  }
   0x1   :  { %13 = vsyncpa [#allocation6], 0 }
   0x2   :  { %14 = vsyncpa [#allocation4], 0  ;;  %s757_s24 = smov [#allocation2]  }
   0x3   :  { %s22_s25 = sshll.u32 %s757_s24, 4  ;;  %s23_s25 = int_to_ptr.vmem [resolvable:$true] %s22_s25 }
   0x4   :  { %s699_s26 = scalar_lea.vmem %s23_s25, 256  ;;  %p704_p1 = scmp.lt.s32.totalorder %s23_s25, %s23_s25 }
   0x5   :  { %p700_p0 = scmp.ne.s32.totalorder %s23_s25, %s699_s26  ;;  %p705_p2 = scmp.lt.s32.totalorder %s699_s26, %s699_s26 }
   0x7   :  { %p706_p3 = por %p705_p2, %p704_p1 }
   0x9   :  { %p707_p4 = pnand %p706_p3, %p700_p0 }
   0xb   :  { %710 = shalt.err (!%p707_p4)
}
   0xc   :  { %s758_s27 = smov 128   ;;  %s759_s28 = smov 8  }
   0xd   :  { %28 = dma.hbm_to_vmem [thread:$0]  %s894_s1, 256, %s23_s25, [#allocation3], %s758_s27, %s758_s27, %s759_s28  }
   0xe   :  { %s760_s8 = smov [#allocation5]  }
   0xf   :  { %s34_s9 = sshll.u32 %s760_s8, 4  ;;  %s35_s9 = int_to_ptr.vmem [resolvable:$true] %s34_s9 }
  0x10   :  { %s719_s10 = scalar_lea.vmem %s35_s9, 2048  ;;  %p724_p6 = scmp.lt.s32.totalorder %s35_s9, %s35_s9 }
  0x11   :  { %p720_p5 = scmp.ne.s32.totalorder %s35_s9, %s719_s10  ;;  %p725_p7 = scmp.lt.s32.totalorder %s719_s10, %s719_s10 }
  0x13   :  { %p726_p8 = por %p725_p7, %p724_p6 }
  0x15   :  { %p727_p9 = pnand %p726_p8, %p720_p5 }
  0x17   :  { %730 = shalt.err (!%p727_p9)
}
  0x18   :  { %s761_s11 = smov 64   ;;  %s762_s12 = smov 4  }
  0x19   :  { %40 = dma.hbm_to_vmem [thread:$0]  %s895_s2, 2048, %s35_s9, [#allocation6], %s761_s11, %s761_s11, %s762_s12  }
  0x1a   :  { %751 = dma.done.wait [#allocation3], 256  }
  0x1b   :  { %752 = vsyncadd [#allocation3], 4294967040 }
  0x1c   :  { %753 = dma.done.wait [#allocation6], 2048  }
  0x1d   :  { %754 = vsyncadd [#allocation6], 4294965248  ;;  %v763_v0 = vmov 0   ;;  %v656_v1 = vld [vmem:[#allocation2 + $0x4] ss:$8 sps:$4 sm:$0xff]   ;;  %vm69_vm0 = vcmask 130048  }
  0x1e   :  { %105 = vmatprep.mubr.bf16.mxu0 %v763_v0  ;;  %v658_v2 = vld [vmem:[#allocation2] ss:$8 sps:$4 sm:$0xff]   ;;  %87 = vmatprep.subr.bf16.mxu0 %v656_v1  ;;  %v663_v8 = vld [vmem:[#allocation5 + $0x68] sm:$0xff]   ;;  %v665_v10 = vld [vmem:[#allocation5 + $0x60] sm:$0xff]   ;;  %v764_v21 = vmov 0.0   ;;  %vm765_vm1 = vmmov 0  }
  0x1f   :  { %v56_v3 = vld [vmem:[%s893_s0] sm:$0xf]  ;;  %v659_v4 = vld [vmem:[#allocation5 + $0x78] sm:$0xff]   ;;  %88 = vmatpush1.bf16.msra.mxu0 %v658_v2  ;;  %v664_v9 = vld [vmem:[#allocation5 + $0x28] sm:$0xff]   ;;  %s766_s22 = smov [#allocation7]  }
  0x20   :  { %v660_v5 = vld [vmem:[#allocation5 + $0x38] sm:$0xff]   ;;  %566 = vmatprep.subr.bf16.mxu1 %v659_v4  ;;  %v661_v6 = vld [vmem:[#allocation5 + $0x70] sm:$0xff]   ;;  %v666_v11 = vld [vmem:[#allocation5 + $0x20] sm:$0xff]   ;;  %606 = vmatprep.subr.bf16.mxu0 %v764_v21  ;;  %s519_s23 = sshll.u32 %s766_s22, 4  ;;  %s520_s23 = int_to_ptr.vmem [resolvable:$true] %s519_s23 }
  0x21   :  { %567 = vmatpush3.bf16.msra.mxu1 %v660_v5  ;;  %v662_v7 = vld [vmem:[#allocation5 + $0x30] sm:$0xff]   ;;  %v667_v12 = vld [vmem:[#allocation5 + $0x58] sm:$0xff]   ;;  %v671_v16 = vld [vmem:[#allocation5 + $0x48] sm:$0xff]   ;;  %p736_p11 = scmp.lt.s32.totalorder %s520_s23, %s520_s23 }
  0x22   :  { %531 = vmatmul.mubr.msk.bf16.vlgmr.msra.gmra.mxu0 %vm69_vm0, %v56_v3  ;;  %568 = vmatprep.subr.bf16.mxu1 %v661_v6  ;;  %v668_v13 = vld [vmem:[#allocation5 + $0x18] sm:$0xff]   ;;  %v669_v14 = vld [vmem:[#allocation5 + $0x50] sm:$0xff]   ;;  %v672_v17 = vld [vmem:[#allocation5 + $0x8] sm:$0xff]  }
  0x23   :  { %v670_v15 = vld [vmem:[#allocation5 + $0x10] sm:$0xff]   ;;  %v673_v18 = vld [vmem:[#allocation5 + $0x40] sm:$0xff]   ;;  %v675_v20 = vld [vmem:[%s897_s4 + $0x38] sm:$0xff]   ;;  %622 = vmatprep.mubr.msk.bf16.mxu0 %vm765_vm1, %v764_v21 }
  0x24   :  { %v674_v19 = vld [vmem:[#allocation5] sm:$0xff]   ;;  %607 = vmatpush3.bf16.msra.mxu0 %v675_v20  ;;  %v677_v23 = vld [vmem:[%s897_s4 + $0x28] sm:$0xff]   ;;  %v678_v24 = vld [vmem:[%s897_s4 + $0x20] sm:$0xff]  }
  0x25   :  { %569 = vmatpush3.bf16.msra.mxu1 %v662_v7  ;;  %v676_v22 = vld [vmem:[%s897_s4 + $0x30] sm:$0xff]   ;;  %608 = vmatprep.subr.bf16.mxu0 %v764_v21  ;;  %v679_v25 = vld [vmem:[%s897_s4 + $0x18] sm:$0xff]   ;;  %v681_v35 = vld [vmem:[%s897_s4 + $0x8] sm:$0xff]  }
  0x26   :  { %570 = vmatprep.subr.bf16.mxu1 %v663_v8  ;;  %v680_v34 = vld [vmem:[%s897_s4 + $0x10] sm:$0xff]   ;;  %v682_v36 = vld [vmem:[%s897_s4] sm:$0xff]   ;;  %v683_v37 = vld [vmem:[%s899_s6 + $0x38] sm:$0xff]  }
  0x27   :  { %v684_v38 = vld [vmem:[%s899_s6 + $0x30] sm:$0xff]   ;;  %v685_v39 = vld [vmem:[%s899_s6 + $0x28] sm:$0xff]   ;;  %v686_v40 = vld [vmem:[%s899_s6 + $0x20] sm:$0xff]  }
  0x28   :  { %609 = vmatpush3.bf16.msra.mxu0 %v676_v22  ;;  %v687_v41 = vld [vmem:[%s899_s6 + $0x18] sm:$0xff]   ;;  %v688_v42 = vld [vmem:[%s899_s6 + $0x10] sm:$0xff]   ;;  %v532_v44 = vld [vmem:[%s896_s3] ss:$0 sm:$0xff] }
  0x29   :  { %571 = vmatpush3.bf16.msra.mxu1 %v664_v9  ;;  %610 = vmatprep.subr.bf16.mxu0 %v764_v21  ;;  %v689_v52 = vld [vmem:[%s899_s6 + $0x8] sm:$0xff]   ;;  %v690_v53 = vld [vmem:[%s899_s6] sm:$0xff]   ;;  %s731_s6 = scalar_lea.vmem %s520_s23, 128 }
  0x2a   :  { %572 = vmatprep.subr.bf16.mxu1 %v665_v10  ;;  %v549_v54 = vld [vmem:[%s898_s5] ss:$0 sm:$0xff]  ;;  %p732_p10 = scmp.ne.s32.totalorder %s520_s23, %s731_s6  ;;  %p737_p12 = scmp.lt.s32.totalorder %s731_s6, %s731_s6 }
  0x2c   :  { %611 = vmatpush3.bf16.msra.mxu0 %v677_v23  ;;  %p738_p13 = por %p737_p12, %p736_p11 }
  0x2d   :  { %573 = vmatpush3.bf16.msra.mxu1 %v666_v11  ;;  %612 = vmatprep.subr.bf16.mxu0 %v764_v21 }
  0x2e   :  { %574 = vmatprep.subr.bf16.mxu1 %v667_v12  ;;  %p739_p0 = pnand %p738_p13, %p732_p10 }
  0x30   :  { %613 = vmatpush3.bf16.msra.mxu0 %v678_v24 }
  0x31   :  { %575 = vmatpush3.bf16.msra.mxu1 %v668_v13  ;;  %614 = vmatprep.subr.bf16.mxu0 %v764_v21 }
  0x32   :  { %576 = vmatprep.subr.bf16.mxu1 %v669_v14 }
  0x34   :  { %615 = vmatpush3.bf16.msra.mxu0 %v679_v25 }
  0x35   :  { %577 = vmatpush3.bf16.msra.mxu1 %v670_v15  ;;  %616 = vmatprep.subr.bf16.mxu0 %v764_v21 }
  0x36   :  { %578 = vmatprep.subr.bf16.mxu1 %v671_v16 }
  0x38   :  { %617 = vmatpush3.bf16.msra.mxu0 %v680_v34 }
  0x39   :  { %579 = vmatpush3.bf16.msra.mxu1 %v672_v17  ;;  %618 = vmatprep.subr.bf16.mxu0 %v764_v21 }
  0x3a   :  { %580 = vmatprep.subr.bf16.mxu1 %v673_v18 }
  0x3c   :  { %619 = vmatpush3.bf16.msra.mxu0 %v681_v35 }
  0x3d   :  { %581 = vmatpush3.bf16.msra.mxu1 %v674_v19  ;;  %620 = vmatprep.subr.bf16.mxu0 %v764_v21 }
  0x3e   :  { %626 = vmatprep.subr.bf16.mxu1 %v764_v21 }
  0x40   :  { %621 = vmatpush3.bf16.msra.mxu0 %v682_v36 }
  0xe2   :  { %v107_v26 = vpop.f32.mrf.mxu0 }
  0xe3   :  { %v114_v27 = vmax.f32 %v107_v26, 0.0 }
  0xe4   :  { %v109_v28 = vpop.f32.mrf.mxu0 }
  0xe5   :  { %v115_v29 = vmax.f32 %v109_v28, 0.0  ;;  %v116_v32 = vpack.c.bf16 %v114_v27, %v114_v27 }
  0xe6   :  { %v111_v30 = vpop.f32.mrf.mxu0 }
  0xe7   :  { %v117_v31 = vpack.c.bf16 %v115_v29, %v115_v29 }
  0xe8   :  { %v112_v33 = vpop.f32.mrf.mxu0 }
  0xe9   :  { %285 = vmatprep.mubr.bf16.mxu1 %v117_v31 }
  0xea   :  { %286 = vmatmul.mubr.bf16.vlgmr.msra.gmra.mxu1 %v116_v32 }
  0xeb   :  { %642 = vmatprep.mubr.msk.bf16.mxu1 %vm765_vm1, %v764_v21  ;;  %627 = vmatpush3.bf16.msra.mxu1 %v683_v37 }
  0xec   :  { %628 = vmatprep.subr.bf16.mxu1 %v764_v21 }
  0xef   :  { %629 = vmatpush3.bf16.msra.mxu1 %v684_v38 }
  0xf0   :  { %630 = vmatprep.subr.bf16.mxu1 %v764_v21 }
  0xf3   :  { %631 = vmatpush3.bf16.msra.mxu1 %v685_v39 }
  0xf4   :  { %632 = vmatprep.subr.bf16.mxu1 %v764_v21 }
  0xf7   :  { %633 = vmatpush3.bf16.msra.mxu1 %v686_v40 }
  0xf8   :  { %634 = vmatprep.subr.bf16.mxu1 %v764_v21 }
  0xfb   :  { %635 = vmatpush3.bf16.msra.mxu1 %v687_v41 }
  0xfc   :  { %636 = vmatprep.subr.bf16.mxu1 %v764_v21 }
  0xff   :  { %637 = vmatpush3.bf16.msra.mxu1 %v688_v42 }
 0x100   :  { %638 = vmatprep.subr.bf16.mxu1 %v764_v21 }
 0x103   :  { %639 = vmatpush3.bf16.msra.mxu1 %v689_v52 }
 0x104   :  { %640 = vmatprep.subr.bf16.mxu1 %v764_v21 }
 0x107   :  { %641 = vmatpush3.bf16.msra.mxu1 %v690_v53 }
 0x1aa   :  { %v582_v43 = vpop.f32.mrf.mxu1 }
 0x1ac   :  { %v583_v45 = vpop.f32.mrf.mxu1 }
 0x1ad   :  { %v584_v46 = vadd.f32 %v583_v45, %v582_v43 }
 0x1ae   :  { %v585_v47 = vpop.f32.mrf.mxu1 }
 0x1af   :  { %v288_v48 = vadd.f32 %v584_v46, %v532_v44 }
 0x1b0   :  { %v586_v49 = vpop.f32.mrf.mxu1 }
 0x1b1   :  { %v293_v50 = vmax.f32 %v288_v48, 0.0 }
 0x1b3   :  { %v294_v51 = vpack.c.bf16 %v293_v50, %v293_v50 }
 0x1b5   :  { %623 = vmatmul.mubr.bf16.vlgmr.msra.gmra.mxu0 %v294_v51 }
 0x275   :  { %v400_v55 = vpop.f32.mrf.mxu0 }
 0x276   :  { %v401_v56 = vadd.f32 %v549_v54, %v400_v55 }
 0x277   :  { %v624_v57 = vpop.f32.mrf.mxu0 }
 0x278   :  { %v406_v58 = vmax.f32 %v401_v56, 0.0 }
 0x279   :  { %v403_v59 = vpop.f32.mrf.mxu0 }
 0x27a   :  { %v407_v60 = vpack.c.bf16 %v406_v58, %v406_v58 }
 0x27b   :  { %v625_v61 = vpop.f32.mrf.mxu0 }
 0x27c   :  { %643 = vmatmul.mubr.bf16.vlgmr.msra.gmra.mxu1 %v407_v60 }
 0x33c   :  { %v506_v62 = vpop.f32.mrf.mxu1 }
 0x33d   :  { %512 = vst.msk [vmem:[#allocation7] sm:$0xff] %vm69_vm0, %v506_v62 }
 0x33e   :  { %v644_v63 = vpop.f32.mrf.mxu1 }
 0x33f   :  { %742 = shalt.err (!%p739_p0)
}
 0x340   :  { %522 = dma.vmem_to_hbm [thread:$0]  %s520_s23, 128, %s900_s7, [#allocation4]   ;;  %v509_v0 = vpop.f32.mrf.mxu1 }
 0x342   :  { %v645_v1 = vpop.f32.mrf.mxu1 }
 0x343   :  { %755 = dma.done.wait [#allocation4], 128  }
 0x344   :  { %756 = vsyncadd [#allocation4], 4294967168 }
 0x345   :  { %526 = vsyncpa [#allocation3], 1 }
 0x346   :  { %527 = vsyncpa [#allocation6], 1 }
 0x347   :  { %528 = vsyncpa [#allocation4], 1 }

</bundles_post_ra>
